<compile_context>
chip_gen: v5e
topology: v5e:2x2
jax: 0.10.0
libtpu: 0.0.40
codegen_flags: <defaults>
</compile_context>

<pallas_src>
import functools

import jax
import jax.numpy as jnp
from jax.experimental import pallas as pl
from jax.experimental.pallas import tpu as pltpu

LN_EPS = 1e-5


def _round_up(n, m):
    return ((n + m - 1) // m) * m


def adaptformer_kernel(x_ref, ln_w_ref, ln_b_ref,
                       wd_ref, bd_ref, wu_ref, bu_ref, scale_ref,
                       o_ref, *, true_d, matmul_dtype):
    # One grid step processes a (tm, Dp) tile of tokens end-to-end.
    x = x_ref[...].astype(jnp.float32)                       # (tm, Dp)

    # --- LayerNorm over last dim, single-pass statistics ---
    # Padded feature lanes are zero, so the sums equal the unpadded sums;
    # divide by the true feature count.
    inv_d = jnp.float32(1.0 / true_d)
    s = jnp.sum(x, axis=-1, keepdims=True)
    s2 = jnp.sum(x * x, axis=-1, keepdims=True)
    mean = s * inv_d
    var = jnp.maximum(s2 * inv_d - mean * mean, 0.0)
    xn = (x - mean) * jax.lax.rsqrt(var + LN_EPS)
    # ln_w is zero on padded lanes -> padded lanes of xn become exactly 0.
    xn = xn * ln_w_ref[...] + ln_b_ref[...]                  # (tm, Dp)

    # --- down projection + ReLU (MXU, f32 accumulation) ---
    h = jnp.dot(xn.astype(matmul_dtype), wd_ref[...],
                preferred_element_type=jnp.float32)          # (tm, Bp)
    h = jnp.maximum(h + bd_ref[...], 0.0)

    # --- up projection + bias + scale ---
    y = jnp.dot(h.astype(matmul_dtype), wu_ref[...],
                preferred_element_type=jnp.float32)          # (tm, Dp)
    y = (y + bu_ref[...]) * scale_ref[0]

    o_ref[...] = y.astype(o_ref.dtype)


def adaptformer_forward(x, ln_w, ln_b, w_down, b_down, w_up, b_up, scale,
                        *, tm=512, matmul_dtype=jnp.bfloat16):
    """x: (B, S, D) float32.  Returns (B, S, D).

    Weights are stored row-major for the matmuls: w_down (D, bottle),
    w_up (bottle, D).  matmul_dtype=jnp.bfloat16 is the recommended
    production setting on v6e/v7x; pass jnp.float32 for bit-tighter results.
    """
    B, S, D = x.shape
    bottle = w_down.shape[1]
    N = B * S

    # Lane-dense padded dims (multiples of 128 on the lane axis).
    Dp = _round_up(D, 128)
    Bp = _round_up(bottle, 128)

    # Row tile: big enough to hide per-step overhead, capped so that the
    # double-buffered f32 in/out tiles stay well inside the v7x scoped-VMEM
    # default (~32 MiB); weights are small and resident.
    vmem_budget = 16 << 20                       # bytes for x/out streams
    bytes_per_row = 2 * Dp * 4                   # f32 in + f32 out per row
    max_tm = max(8, (vmem_budget // (2 * bytes_per_row)) // 8 * 8)
    tm_eff = min(tm, max_tm, _round_up(N, 8))
    Np = _round_up(N, tm_eff)                    # ragged tail handled by pad

    f32 = jnp.float32
    x2 = jnp.pad(x.reshape(N, D).astype(f32), ((0, Np - N), (0, Dp - D)))
    ln_w2 = jnp.pad(ln_w.astype(f32).reshape(1, D), ((0, 0), (0, Dp - D)))
    ln_b2 = jnp.pad(ln_b.astype(f32).reshape(1, D), ((0, 0), (0, Dp - D)))
    wd2 = jnp.pad(w_down.astype(matmul_dtype),
                  ((0, Dp - D), (0, Bp - bottle)))
    bd2 = jnp.pad(b_down.astype(f32).reshape(1, bottle),
                  ((0, 0), (0, Bp - bottle)))
    wu2 = jnp.pad(w_up.astype(matmul_dtype),
                  ((0, Bp - bottle), (0, Dp - D)))
    bu2 = jnp.pad(b_up.astype(f32).reshape(1, D), ((0, 0), (0, Dp - D)))
    scale2 = scale.reshape(1).astype(f32)

    const = lambda i: (0, 0)   # params: same (only) block for every grid step

    cost = pl.CostEstimate(
        flops=int(4 * N * D * bottle),
        transcendentals=int(N),
        bytes_accessed=int(2 * Np * Dp * 4
                           + 2 * Dp * Bp * jnp.dtype(matmul_dtype).itemsize
                           + (3 * Dp + Bp) * 4),
    )

    kernel = functools.partial(adaptformer_kernel,
                               true_d=D, matmul_dtype=matmul_dtype)

    out2 = pl.pallas_call(
        kernel,
        out_shape=jax.ShapeDtypeStruct((Np, Dp), x.dtype),
        grid_spec=pltpu.PrefetchScalarGridSpec(
            num_scalar_prefetch=0,
            grid=(Np // tm_eff,),
            in_specs=[
                pl.BlockSpec((tm_eff, Dp), lambda i: (i, 0)),   # x tile
                pl.BlockSpec((1, Dp), const),                   # ln weight
                pl.BlockSpec((1, Dp), const),                   # ln bias
                pl.BlockSpec((Dp, Bp), const),                  # W_down
                pl.BlockSpec((1, Bp), const),                   # b_down
                pl.BlockSpec((Bp, Dp), const),                  # W_up
                pl.BlockSpec((1, Dp), const),                   # b_up
                pl.BlockSpec(memory_space=pltpu.MemorySpace.SMEM),  # scale
            ],
            out_specs=pl.BlockSpec((tm_eff, Dp), lambda i: (i, 0)),
        ),
        compiler_params=pltpu.CompilerParams(
            dimension_semantics=("parallel",)),
        cost_estimate=cost,
    )(x2, ln_w2, ln_b2, wd2, bd2, wu2, bu2, scale2)

    return out2[:N, :D].reshape(B, S, D)


def adaptformer_ref(x, ln_w, ln_b, w_down, b_down, w_up, b_up, scale):
    mean = jnp.mean(x, axis=-1, keepdims=True)
    var = jnp.mean((x - mean) ** 2, axis=-1, keepdims=True)
    xn = (x - mean) * jax.lax.rsqrt(var + LN_EPS) * ln_w + ln_b
    h = jnp.maximum(xn @ w_down + b_down, 0.0)
    y = h @ w_up + b_up
    return y * scale


if __name__ == "__main__":
    # Small shapes consistent with the module: tokens (B, S, in_dim)
    B, S = 2, 8
    in_dim, bottle_dim = 32, 16

    key = jax.random.PRNGKey(0)
    kx, kd, ku, klw, klb, kbd, kbu = jax.random.split(key, 7)

    x = jax.random.normal(kx, (B, S, in_dim), dtype=jnp.float32)

    # Deterministic synthetic parameters (shapes from AdaptFormer.__init__).
    # NOTE: torch init zeroes up_proj.weight / biases; we use small random
    # values instead so the kernel path is exercised non-trivially.
    ln_w = jnp.ones((in_dim,), jnp.float32)
    ln_b = 0.01 * jax.random.normal(klb, (in_dim,), jnp.float32)
    w_down = (jax.random.normal(kd, (in_dim, bottle_dim), jnp.float32)
              * (1.0 / jnp.sqrt(3.0 * in_dim)))
    b_down = 0.01 * jax.random.normal(kbd, (bottle_dim,), jnp.float32)
    w_up = (jax.random.normal(ku, (bottle_dim, in_dim), jnp.float32)
            * (1.0 / jnp.sqrt(bottle_dim)))
    b_up = 0.01 * jax.random.normal(kbu, (in_dim,), jnp.float32)
    scale = jnp.ones((1,), jnp.float32)

    ref = adaptformer_ref(x, ln_w, ln_b, w_down, b_down, w_up, b_up, scale)

    # 1) f32 matmul operands: tight correctness check.
    out_f32 = adaptformer_forward(x, ln_w, ln_b, w_down, b_down,
                                  w_up, b_up, scale,
                                  matmul_dtype=jnp.float32)
    out_f32 = jax.block_until_ready(out_f32)
    assert out_f32.shape == (B, S, in_dim)
    assert jnp.allclose(out_f32, ref, atol=1e-4, rtol=1e-4), \
        "f32 kernel mismatch vs reference"

    # 2) bf16 matmul operands (recommended v6e/v7x production config):
    #    looser tolerance due to bf16 operand rounding.
    out_bf16 = adaptformer_forward(x, ln_w, ln_b, w_down, b_down,
                                   w_up, b_up, scale)
    out_bf16 = jax.block_until_ready(out_bf16)
    assert out_bf16.shape == (B, S, in_dim)
    assert jnp.allclose(out_bf16, ref, atol=5e-2, rtol=5e-2), \
        "bf16 kernel mismatch vs reference"

    print("KERNEL_OK")
</pallas_src>

<mosaic_0001>
module attributes {stable_mosaic.version = 11 : i64} {
  func.func @adaptformer_kernel(%arg0: i32, %arg1: memref<16x128xf32, #tpu.memory_space<vmem>>, %arg2: memref<1x128xf32, #tpu.memory_space<vmem>>, %arg3: memref<1x128xf32, #tpu.memory_space<vmem>>, %arg4: memref<128x128xf32, #tpu.memory_space<vmem>>, %arg5: memref<1x128xf32, #tpu.memory_space<vmem>>, %arg6: memref<128x128xf32, #tpu.memory_space<vmem>>, %arg7: memref<1x128xf32, #tpu.memory_space<vmem>>, %arg8: memref<1xf32, #tpu.memory_space<smem>>, %arg9: memref<16x128xf32, #tpu.memory_space<vmem>>) attributes {dimension_semantics = [#tpu.dimension_semantics<parallel>], iteration_bounds = array<i64: 1>, scalar_prefetch = 0 : i64, scratch_operands = 0 : i64, tpu.core_type = #tpu.core_type<tc>, window_params = [{transform_indices = @transform_0, window_bounds = array<i64: 16, 128>}, {pipeline_mode = #tpu.pipeline_mode<synchronous>, transform_indices = @transform_1, window_bounds = array<i64: 1, 128>}, {pipeline_mode = #tpu.pipeline_mode<synchronous>, transform_indices = @transform_2, window_bounds = array<i64: 1, 128>}, {pipeline_mode = #tpu.pipeline_mode<synchronous>, transform_indices = @transform_3, window_bounds = array<i64: 128, 128>}, {pipeline_mode = #tpu.pipeline_mode<synchronous>, transform_indices = @transform_4, window_bounds = array<i64: 1, 128>}, {pipeline_mode = #tpu.pipeline_mode<synchronous>, transform_indices = @transform_5, window_bounds = array<i64: 128, 128>}, {pipeline_mode = #tpu.pipeline_mode<synchronous>, transform_indices = @transform_6, window_bounds = array<i64: 1, 128>}, {transform_indices = @transform_7, window_bounds = array<i64: 1>}, {transform_indices = @transform_8, window_bounds = array<i64: 16, 128>}]} {
    %c0 = arith.constant 0 : index
    %c0_0 = arith.constant 0 : index
    %0 = vector.load %arg1[%c0, %c0_0] : memref<16x128xf32, #tpu.memory_space<vmem>>, vector<16x128xf32>
    %cst = arith.constant dense<0.000000e+00> : vector<16xf32>
    %1 = vector.multi_reduction <add>, %0, %cst [1] : vector<16x128xf32> to vector<16xf32>
    %2 = vector.shape_cast %1 : vector<16xf32> to vector<16x1xf32>
    %3 = arith.mulf %0, %0 : vector<16x128xf32>
    %cst_1 = arith.constant dense<0.000000e+00> : vector<16xf32>
    %4 = vector.multi_reduction <add>, %3, %cst_1 [1] : vector<16x128xf32> to vector<16xf32>
    %5 = vector.shape_cast %4 : vector<16xf32> to vector<16x1xf32>
    %cst_2 = arith.constant 3.125000e-02 : f32
    %6 = vector.broadcast %cst_2 : f32 to vector<16x1xf32>
    %7 = arith.mulf %2, %6 : vector<16x1xf32>
    %cst_3 = arith.constant 3.125000e-02 : f32
    %8 = vector.broadcast %cst_3 : f32 to vector<16x1xf32>
    %9 = arith.mulf %5, %8 : vector<16x1xf32>
    %10 = arith.mulf %7, %7 : vector<16x1xf32>
    %11 = arith.subf %9, %10 : vector<16x1xf32>
    %cst_4 = arith.constant 0.000000e+00 : f32
    %12 = vector.broadcast %cst_4 : f32 to vector<16x1xf32>
    %13 = arith.maximumf %11, %12 : vector<16x1xf32>
    %14 = vector.broadcast %7 : vector<16x1xf32> to vector<16x128xf32>
    %15 = arith.subf %0, %14 : vector<16x128xf32>
    %cst_5 = arith.constant 9.99999974E-6 : f32
    %16 = vector.broadcast %cst_5 : f32 to vector<16x1xf32>
    %17 = arith.addf %13, %16 : vector<16x1xf32>
    %18 = math.rsqrt %17 : vector<16x1xf32>
    %19 = vector.broadcast %18 : vector<16x1xf32> to vector<16x128xf32>
    %20 = arith.mulf %15, %19 : vector<16x128xf32>
    %c0_6 = arith.constant 0 : index
    %c0_7 = arith.constant 0 : index
    %21 = vector.load %arg2[%c0_6, %c0_7] : memref<1x128xf32, #tpu.memory_space<vmem>>, vector<1x128xf32>
    %22 = vector.broadcast %21 : vector<1x128xf32> to vector<16x128xf32>
    %23 = arith.mulf %20, %22 : vector<16x128xf32>
    %c0_8 = arith.constant 0 : index
    %c0_9 = arith.constant 0 : index
    %24 = vector.load %arg3[%c0_8, %c0_9] : memref<1x128xf32, #tpu.memory_space<vmem>>, vector<1x128xf32>
    %25 = vector.broadcast %24 : vector<1x128xf32> to vector<16x128xf32>
    %26 = arith.addf %23, %25 : vector<16x128xf32>
    %c0_10 = arith.constant 0 : index
    %c0_11 = arith.constant 0 : index
    %27 = vector.load %arg4[%c0_10, %c0_11] : memref<128x128xf32, #tpu.memory_space<vmem>>, vector<128x128xf32>
    %cst_12 = arith.constant dense<0.000000e+00> : vector<16x128xf32>
    %28 = tpu.matmul %26, %27, %cst_12 {dimension_numbers = #tpu.dot_dimension_numbers<[1], [0], [0], [1], [0, 0, 1, 1], [], []>} : vector<16x128xf32>, vector<128x128xf32>, vector<16x128xf32> -> vector<16x128xf32>
    %c0_13 = arith.constant 0 : index
    %c0_14 = arith.constant 0 : index
    %29 = vector.load %arg5[%c0_13, %c0_14] : memref<1x128xf32, #tpu.memory_space<vmem>>, vector<1x128xf32>
    %30 = vector.broadcast %29 : vector<1x128xf32> to vector<16x128xf32>
    %31 = arith.addf %28, %30 : vector<16x128xf32>
    %cst_15 = arith.constant 0.000000e+00 : f32
    %32 = vector.broadcast %cst_15 : f32 to vector<16x128xf32>
    %33 = arith.maximumf %31, %32 : vector<16x128xf32>
    %c0_16 = arith.constant 0 : index
    %c0_17 = arith.constant 0 : index
    %34 = vector.load %arg6[%c0_16, %c0_17] : memref<128x128xf32, #tpu.memory_space<vmem>>, vector<128x128xf32>
    %cst_18 = arith.constant dense<0.000000e+00> : vector<16x128xf32>
    %35 = tpu.matmul %33, %34, %cst_18 {dimension_numbers = #tpu.dot_dimension_numbers<[1], [0], [0], [1], [0, 0, 1, 1], [], []>} : vector<16x128xf32>, vector<128x128xf32>, vector<16x128xf32> -> vector<16x128xf32>
    %c0_19 = arith.constant 0 : index
    %c0_20 = arith.constant 0 : index
    %36 = vector.load %arg7[%c0_19, %c0_20] : memref<1x128xf32, #tpu.memory_space<vmem>>, vector<1x128xf32>
    %37 = vector.broadcast %36 : vector<1x128xf32> to vector<16x128xf32>
    %38 = arith.addf %35, %37 : vector<16x128xf32>
    %c0_21 = arith.constant 0 : index
    %39 = memref.load %arg8[%c0_21] : memref<1xf32, #tpu.memory_space<smem>>
    %40 = vector.broadcast %39 : f32 to vector<16x128xf32>
    %41 = arith.mulf %38, %40 : vector<16x128xf32>
    %c0_22 = arith.constant 0 : index
    %c0_23 = arith.constant 0 : index
    %42 = vector.load %arg9[%c0_22, %c0_23] : memref<16x128xf32, #tpu.memory_space<vmem>>, vector<16x128xf32>
    tpu.vector_store %arg9[%c0_22, %c0_23], %41 {strides = array<i32>} : memref<16x128xf32, #tpu.memory_space<vmem>>, vector<16x128xf32>,
    return
  }
  func.func @transform_0(%arg0: i32) -> (i32, i32) {
    %c0_i32 = arith.constant 0 : i32
    %c0_i32_0 = arith.constant 0 : i32
    return %arg0, %c0_i32 : i32, i32
  }
  func.func @transform_1(%arg0: i32) -> (i32, i32) {
    %c0_i32 = arith.constant 0 : i32
    %c0_i32_0 = arith.constant 0 : i32
    %c0_i32_1 = arith.constant 0 : i32
    return %c0_i32, %c0_i32_0 : i32, i32
  }
  func.func @transform_2(%arg0: i32) -> (i32, i32) {
    %c0_i32 = arith.constant 0 : i32
    %c0_i32_0 = arith.constant 0 : i32
    %c0_i32_1 = arith.constant 0 : i32
    return %c0_i32, %c0_i32_0 : i32, i32
  }
  func.func @transform_3(%arg0: i32) -> (i32, i32) {
    %c0_i32 = arith.constant 0 : i32
    %c0_i32_0 = arith.constant 0 : i32
    %c0_i32_1 = arith.constant 0 : i32
    return %c0_i32, %c0_i32_0 : i32, i32
  }
  func.func @transform_4(%arg0: i32) -> (i32, i32) {
    %c0_i32 = arith.constant 0 : i32
    %c0_i32_0 = arith.constant 0 : i32
    %c0_i32_1 = arith.constant 0 : i32
    return %c0_i32, %c0_i32_0 : i32, i32
  }
  func.func @transform_5(%arg0: i32) -> (i32, i32) {
    %c0_i32 = arith.constant 0 : i32
    %c0_i32_0 = arith.constant 0 : i32
    %c0_i32_1 = arith.constant 0 : i32
    return %c0_i32, %c0_i32_0 : i32, i32
  }
  func.func @transform_6(%arg0: i32) -> (i32, i32) {
    %c0_i32 = arith.constant 0 : i32
    %c0_i32_0 = arith.constant 0 : i32
    %c0_i32_1 = arith.constant 0 : i32
    return %c0_i32, %c0_i32_0 : i32, i32
  }
  func.func @transform_7(%arg0: i32) -> i32 {
    %c0_i32 = arith.constant 0 : i32
    %c0_i32_0 = arith.constant 0 : i32
    return %c0_i32 : i32
  }
  func.func @transform_8(%arg0: i32) -> (i32, i32) {
    %c0_i32 = arith.constant 0 : i32
    %c0_i32_0 = arith.constant 0 : i32
    return %arg0, %c0_i32 : i32, i32
  }
}

</mosaic_0001>

<bundles_post_ra>
// kernel: tpu_custom_call.1
= control target key start
LH: loop header
LB: loop body
LE: loop exit
PB: predicated region body
PF: predicated region fallthrough
CT: control target
= control target key end

     0   :  { %14 = vsyncpa [#allocation4], 0  ;;  %s512_s0 = inlined_call_operand.hbm [shape: f32[16,128], index: 0, kind: input, shape index: {}]   ;;  %s513_s1 = inlined_call_operand.vmem [shape: f32[1,128], index: 1, kind: input, shape index: {}]   ;;  %s514_s2 = inlined_call_operand.vmem [shape: f32[1,128], index: 2, kind: input, shape index: {}]   ;;  %s515_s3 = inlined_call_operand.hbm [shape: f32[128,128], index: 3, kind: input, shape index: {}]   ;;  %s516_s4 = inlined_call_operand.vmem [shape: f32[1,128], index: 4, kind: input, shape index: {}]   ;;  %s517_s5 = inlined_call_operand.hbm [shape: f32[128,128], index: 5, kind: input, shape index: {}]   ;;  %s518_s6 = inlined_call_operand.vmem [shape: f32[1,128], index: 6, kind: input, shape index: {}]   ;;  %s519_s7 = inlined_call_operand.<no memory space> [shape: f32[1], index: 7, kind: input, shape index: {}]   ;;  %s520_s8 = inlined_call_operand.hbm [shape: f32[16,128], index: 8, kind: output, shape index: {}]  }
   0x1   :  { %15 = vsyncpa [#allocation7], 0 }
   0x2   :  { %16 = vsyncpa [#allocation5], 0  ;;  %s38_s29 = sshll.u32 %s515_s3, 4  ;;  %s400_s30 = smov [#allocation6]   ;;  %s39_s29 = int_to_ptr.hbm [resolvable:$true] %s38_s29 }
   0x3   :  { %s40_s9 = sshll.u32 %s400_s30, 4  ;;  %s21_s12 = sshll.u32 %s512_s0, 4  ;;  %s41_s9 = int_to_ptr.vmem [resolvable:$true] %s40_s9  ;;  %s22_s12 = int_to_ptr.hbm [resolvable:$true] %s21_s12 }
   0x4   :  { %s401_s13 = smov 128   ;;  %s402_s14 = smov 8  }
   0x5   :  { %46 = dma.hbm_to_vmem [thread:$0]  %s39_s29, 2048, %s41_s9, [#allocation7], %s401_s13, %s401_s13, %s402_s14  }
   0x6   :  { %s403_s15 = smov [#allocation3]   ;;  %s53_s3 = sshll.u32 %s517_s5, 4  ;;  %s54_s3 = int_to_ptr.hbm [resolvable:$true] %s53_s3 }
   0x7   :  { %s23_s16 = sshll.u32 %s403_s15, 4  ;;  %s404_s0 = smov [#allocation8]   ;;  %s24_s16 = int_to_ptr.vmem [resolvable:$true] %s23_s16 }
   0x8   :  { %29 = dma.hbm_to_vmem [thread:$0]  %s22_s12, 256, %s24_s16, [#allocation4], %s401_s13, %s401_s13, %s402_s14  }
   0x9   :  { %s55_s19 = sshll.u32 %s404_s0, 4  ;;  %s56_s19 = int_to_ptr.vmem [resolvable:$true] %s55_s19 }
   0xa   :  { %61 = dma.hbm_to_vmem [thread:$0]  %s54_s3, 2048, %s56_s19, [#allocation7], %s401_s13, %s401_s13, %s402_s14  }
   0xb   :  { %394 = dma.done.wait [#allocation4], 256  }
   0xc   :  { %395 = vsyncadd [#allocation4], 4294967040 }
   0xd   :  { %396 = dma.done.wait [#allocation7], 4096  }
   0xe   :  { %397 = vsyncadd [#allocation7], 4294963200  ;;  %v469_v0 = vld [vmem:[#allocation3 + $0x8] sm:$0xff]  ;;  %v471_v1 = vld [vmem:[#allocation3] sm:$0xff]  ;;  %s238_s30 = sshll.u32 %s520_s8, 4  ;;  %s239_s30 = int_to_ptr.hbm [resolvable:$true] %s238_s30 }
   0xf   :  { %82 = vadd.xlane.f32.xlu0 %v469_v0  ;;  %80 = vadd.xlane.f32.xlu1 %v471_v1  ;;  %v85_v2 = vmul.f32 %v469_v0, %v469_v0  ;;  %v84_v3 = vmul.f32 %v471_v1, %v471_v1  ;;  %v153_v4 = vld [vmem:[#allocation6 + $0x78] sm:$0xff]  ;;  %v152_v5 = vld [vmem:[#allocation6 + $0x70] sm:$0xff]  ;;  %v151_v6 = vld [vmem:[#allocation6 + $0x68] sm:$0xff] }
  0x10   :  { %158 = vmatpush.msra.mxu0 %v153_v4  ;;  %252 = vmatpush.msra.mxu2 %v153_v4  ;;  %v150_v7 = vld [vmem:[#allocation6 + $0x60] sm:$0xff]  ;;  %v149_v8 = vld [vmem:[#allocation6 + $0x58] sm:$0xff]  ;;  %v148_v9 = vld [vmem:[#allocation6 + $0x50] sm:$0xff] }
  0x11   :  { %v147_v10 = vld [vmem:[#allocation6 + $0x48] sm:$0xff]  ;;  %v146_v11 = vld [vmem:[#allocation6 + $0x40] sm:$0xff]  ;;  %v145_v12 = vld [vmem:[#allocation6 + $0x38] sm:$0xff] }
  0x12   :  { %159 = vmatpush.msra.mxu0 %v152_v5  ;;  %253 = vmatpush.msra.mxu2 %v152_v5  ;;  %v144_v13 = vld [vmem:[#allocation6 + $0x30] sm:$0xff]  ;;  %v143_v14 = vld [vmem:[#allocation6 + $0x28] sm:$0xff]  ;;  %v142_v15 = vld [vmem:[#allocation6 + $0x20] sm:$0xff] }
  0x13   :  { %v141_v18 = vld [vmem:[#allocation6 + $0x18] sm:$0xff]  ;;  %v140_v19 = vld [vmem:[#allocation6 + $0x10] sm:$0xff]  ;;  %v139_v21 = vld [vmem:[#allocation6 + $0x8] sm:$0xff] }
  0x14   :  { %160 = vmatpush.msra.mxu0 %v151_v6  ;;  %254 = vmatpush.msra.mxu2 %v151_v6  ;;  %v138_v23 = vld [vmem:[#allocation6] sm:$0xff]  ;;  %v198_v30 = vld [vmem:[#allocation8 + $0x78] sm:$0xff]  ;;  %v197_v31 = vld [vmem:[#allocation8 + $0x70] sm:$0xff] }
  0x15   :  { %203 = vmatpush.msra.mxu1 %v198_v30  ;;  %268 = vmatpush.msra.mxu3 %v198_v30  ;;  %v196_v34 = vld [vmem:[#allocation8 + $0x68] sm:$0xff]  ;;  %v195_v37 = vld [vmem:[#allocation8 + $0x60] sm:$0xff]  ;;  %v194_v40 = vld [vmem:[#allocation8 + $0x58] sm:$0xff] }
  0x16   :  { %161 = vmatpush.msra.mxu0 %v150_v7  ;;  %255 = vmatpush.msra.mxu2 %v150_v7  ;;  %v193_v41 = vld [vmem:[#allocation8 + $0x50] sm:$0xff]  ;;  %v192_v42 = vld [vmem:[#allocation8 + $0x48] sm:$0xff]  ;;  %v191_v43 = vld [vmem:[#allocation8 + $0x40] sm:$0xff] }
  0x17   :  { %88 = vadd.xlane.f32.xlu0 %v85_v2  ;;  %86 = vadd.xlane.f32.xlu1 %v84_v3  ;;  %v190_v47 = vld [vmem:[#allocation8 + $0x38] sm:$0xff]  ;;  %v189_v50 = vld [vmem:[#allocation8 + $0x30] sm:$0xff]  ;;  %v188_v53 = vld [vmem:[#allocation8 + $0x28] sm:$0xff] }
  0x18   :  { %162 = vmatpush.msra.mxu0 %v149_v8  ;;  %256 = vmatpush.msra.mxu2 %v149_v8  ;;  %v187_v56 = vld [vmem:[#allocation8 + $0x20] sm:$0xff]  ;;  %v186_v59 = vld [vmem:[#allocation8 + $0x18] sm:$0xff]  ;;  %v290_v62 = vld [vmem:[%s513_s1] ss:$0 sm:$0xff] }
  0x19   :  { %204 = vmatpush.msra.mxu1 %v197_v31  ;;  %269 = vmatpush.msra.mxu3 %v197_v31  ;;  %v291_v4 = vld [vmem:[%s514_s2] ss:$0 sm:$0xff] }
  0x1a   :  { %163 = vmatpush.msra.mxu0 %v148_v9  ;;  %257 = vmatpush.msra.mxu2 %v148_v9 }
  0x1b   :  { %205 = vmatpush.msra.mxu1 %v196_v34  ;;  %270 = vmatpush.msra.mxu3 %v196_v34 }
  0x1c   :  { %164 = vmatpush.msra.mxu0 %v147_v10  ;;  %258 = vmatpush.msra.mxu2 %v147_v10  ;;  %v185_v10 = vld [vmem:[#allocation8 + $0x10] sm:$0xff] }
  0x1d   :  { %206 = vmatpush.msra.mxu1 %v195_v37  ;;  %271 = vmatpush.msra.mxu3 %v195_v37 }
  0x1e   :  { %165 = vmatpush.msra.mxu0 %v146_v11  ;;  %259 = vmatpush.msra.mxu2 %v146_v11  ;;  %v183_v11 = vld [vmem:[#allocation8] sm:$0xff] }
  0x1f   :  { %207 = vmatpush.msra.mxu1 %v194_v40  ;;  %272 = vmatpush.msra.mxu3 %v194_v40 }
  0x20   :  { %166 = vmatpush.msra.mxu0 %v145_v12  ;;  %260 = vmatpush.msra.mxu2 %v145_v12  ;;  %v292_v12 = vld [vmem:[%s516_s4] ss:$0 sm:$0xff]  ;;  %s405_s4 = smov [#allocation9]  }
  0x21   :  { %208 = vmatpush.msra.mxu1 %v193_v41  ;;  %273 = vmatpush.msra.mxu3 %v193_v41  ;;  %s236_s27 = sshll.u32 %s405_s4, 4  ;;  %s237_s27 = int_to_ptr.vmem [resolvable:$true] %s236_s27 }
  0x22   :  { %167 = vmatpush.msra.mxu0 %v144_v13  ;;  %261 = vmatpush.msra.mxu2 %v144_v13 }
  0x23   :  { %209 = vmatpush.msra.mxu1 %v192_v42  ;;  %274 = vmatpush.msra.mxu3 %v192_v42 }
  0x24   :  { %168 = vmatpush.msra.mxu0 %v143_v14  ;;  %262 = vmatpush.msra.mxu2 %v143_v14 }
  0x25   :  { %210 = vmatpush.msra.mxu1 %v191_v43  ;;  %275 = vmatpush.msra.mxu3 %v191_v43 }
  0x26   :  { %169 = vmatpush.msra.mxu0 %v142_v15  ;;  %263 = vmatpush.msra.mxu2 %v142_v15 }
  0x27   :  { %211 = vmatpush.msra.mxu1 %v190_v47  ;;  %276 = vmatpush.msra.mxu3 %v190_v47 }
  0x28   :  { %170 = vmatpush.msra.mxu0 %v141_v18  ;;  %264 = vmatpush.msra.mxu2 %v141_v18 }
  0x29   :  { %212 = vmatpush.msra.mxu1 %v189_v50  ;;  %277 = vmatpush.msra.mxu3 %v189_v50 }
  0x2a   :  { %171 = vmatpush.msra.mxu0 %v140_v19  ;;  %265 = vmatpush.msra.mxu2 %v140_v19  ;;  %v293_v19 = vld [vmem:[%s518_s6] ss:$0 sm:$0xff] }
  0x2b   :  { %213 = vmatpush.msra.mxu1 %v188_v53  ;;  %278 = vmatpush.msra.mxu3 %v188_v53 }
  0x2c   :  { %172 = vmatpush.msra.mxu0 %v139_v21  ;;  %266 = vmatpush.msra.mxu2 %v139_v21  ;;  %v227_v21 = vstv %s519_s7 }
  0x2d   :  { %214 = vmatpush.msra.mxu1 %v187_v56  ;;  %279 = vmatpush.msra.mxu3 %v187_v56 }
  0x2e   :  { %173 = vmatpush.msra.mxu0 %v138_v23  ;;  %267 = vmatpush.msra.mxu2 %v138_v23 }
  0x2f   :  { %215 = vmatpush.msra.mxu1 %v186_v59  ;;  %280 = vmatpush.msra.mxu3 %v186_v59 }
  0x31   :  { %216 = vmatpush.msra.mxu1 %v185_v10  ;;  %281 = vmatpush.msra.mxu3 %v185_v10 }
  0x82   :  { %v83_v16 = vpop.xlane.xlu0 %82  ;;  %v81_v17 = vpop.xlane.xlu1 %80 }
  0x83   :  { %v479_v20 = vmul.f32 0.03125, %v81_v17  ;;  %v481_v22 = vmul.f32 0.03125, %v83_v16 }
  0x85   :  { %v94_v24 = vmul.f32 %v479_v20, %v479_v20  ;;  %v95_v27 = vmul.f32 %v481_v22, %v481_v22  ;;  %v101_v60 = vsub.f32 %v469_v0, %v481_v22  ;;  %v100_v63 = vsub.f32 %v471_v1, %v479_v20  ;;  %v184_v1 = vld [vmem:[#allocation8 + $0x8] sm:$0xff] }
  0x86   :  { %217 = vmatpush.msra.mxu1 %v184_v1  ;;  %282 = vmatpush.msra.mxu3 %v184_v1 }
  0x88   :  { %218 = vmatpush.msra.mxu1 %v183_v11  ;;  %283 = vmatpush.msra.mxu3 %v183_v11 }
  0x8a   :  { %v89_v25 = vpop.xlane.xlu0 %88  ;;  %v87_v26 = vpop.xlane.xlu1 %86 }
  0x8b   :  { %v93_v28 = vmul.f32 0.03125, %v89_v25  ;;  %v92_v29 = vmul.f32 0.03125, %v87_v26 }
  0x8d   :  { %v97_v32 = vsub.f32 %v93_v28, %v95_v27  ;;  %v96_v33 = vsub.f32 %v92_v29, %v94_v24 }
  0x8f   :  { %v99_v35 = vmax.f32 %v97_v32, 0.0  ;;  %v98_v36 = vmax.f32 %v96_v33, 0.0 }
  0x91   :  { %v103_v38 = vadd.f32 1e-05, %v99_v35  ;;  %v102_v39 = vadd.f32 1e-05, %v98_v36 }
  0x93   :  { %294 = vrsqrt.f32 %v103_v38  ;;  %vm110_vm1 = vweird.f32 %v102_v39  ;;  %vm120_vm3 = vweird.f32 %v103_v38 }
  0x94   :  { %296 = vrsqrt.f32 %v102_v39 }
  0x99   :  { %v295_v44 = vpop.eup %294 }
  0x9a   :  { %v297_v45 = vpop.eup %296  ;;  %v115_v46 = vmul.f32 %v295_v44, %v103_v38  ;;  %vm121_vm0 = vweird.f32 %v295_v44 }
  0x9b   :  { %v105_v48 = vmul.f32 %v297_v45, %v102_v39  ;;  %vm111_vm2 = vweird.f32 %v297_v45  ;;  %vm122_vm4 = vmor %vm120_vm3, %vm121_vm0 }
  0x9c   :  { %v116_v49 = vmul.f32 %v295_v44, %v115_v46  ;;  %vm112_vm5 = vmor %vm110_vm1, %vm111_vm2 }
  0x9d   :  { %v106_v51 = vmul.f32 %v297_v45, %v105_v48 }
  0x9e   :  { %v117_v52 = vmul.f32 0.5, %v116_v49 }
  0x9f   :  { %v107_v54 = vmul.f32 0.5, %v106_v51 }
  0xa0   :  { %v118_v55 = vsub.f32 1.5, %v117_v52 }
  0xa1   :  { %v108_v57 = vsub.f32 1.5, %v107_v54 }
  0xa2   :  { %v119_v58 = vmul.f32 %v295_v44, %v118_v55 }
  0xa3   :  { %v109_v61 = vmul.f32 %v297_v45, %v108_v57 }
  0xa4   :  { %v123_v2 = vsel %vm122_vm4, %v295_v44, %v119_v58 }
  0xa5   :  { %v113_v3 = vsel %vm112_vm5, %v297_v45, %v109_v61  ;;  %v125_v5 = vmul.f32 %v123_v2, %v101_v60 }
  0xa6   :  { %v124_v0 = vmul.f32 %v113_v3, %v100_v63 }
  0xa7   :  { %v131_v6 = vmul.f32 %v290_v62, %v125_v5 }
  0xa8   :  { %v130_v7 = vmul.f32 %v290_v62, %v124_v0 }
  0xa9   :  { %v137_v8 = vadd.f32 %v291_v4, %v131_v6 }
  0xaa   :  { %v136_v9 = vadd.f32 %v291_v4, %v130_v7 }
  0xab   :  { %177 = vmatmul.f32.vlgmr.msra.gmra.mxu2 %v137_v8 }
  0xac   :  { %174 = vmatmul.f32.vlgmr.msra.gmra.mxu0 %v136_v9 }
 0x129   :  { %v175_v13 = vpop.f32.mrf.mxu0 }
 0x12a   :  { %v176_v14 = vadd.f32 %v292_v12, %v175_v13 }
 0x12c   :  { %v181_v15 = vmax.f32 %v176_v14, 0.0 }
 0x12e   :  { %219 = vmatmul.f32.vlgmr.msra.gmra.mxu1 %v181_v15  ;;  %v178_v16 = vpop.f32.mrf.mxu2 }
 0x12f   :  { %v179_v17 = vadd.f32 %v292_v12, %v178_v16 }
 0x131   :  { %v182_v18 = vmax.f32 %v179_v17, 0.0 }
 0x133   :  { %222 = vmatmul.f32.vlgmr.msra.gmra.mxu3 %v182_v18 }
 0x1ab   :  { %v220_v20 = vpop.f32.mrf.mxu1 }
 0x1ac   :  { %v221_v22 = vadd.f32 %v293_v19, %v220_v20 }
 0x1ae   :  { %v228_v23 = vmul.f32 %v227_v21, %v221_v22 }
 0x1b0   :  { %230 = vst [vmem:[#allocation9] sm:$0xff] %v228_v23 }
 0x1b6   :  { %v223_v24 = vpop.f32.mrf.mxu3 }
 0x1b7   :  { %v224_v25 = vadd.f32 %v293_v19, %v223_v24 }
 0x1b9   :  { %v229_v26 = vmul.f32 %v227_v21, %v224_v25 }
 0x1bb   :  { %231 = vst [vmem:[#allocation9 + $0x8] sm:$0xff] %v229_v26 }
 0x1bc   :  { %244 = dma.vmem_to_hbm [thread:$0]  %s237_s27, 256, %s239_s30, [#allocation5], %s401_s13, %s401_s13, %s402_s14  }
 0x1bd   :  { %398 = dma.done.wait [#allocation5], 256  }
 0x1be   :  { %399 = vsyncadd [#allocation5], 4294967040 }
 0x1bf   :  { %249 = vsyncpa [#allocation4], 1 }
 0x1c0   :  { %250 = vsyncpa [#allocation7], 1 }
 0x1c1   :  { %251 = vsyncpa [#allocation5], 1 }

</bundles_post_ra>
